<compile_context>
chip_gen: v6e
topology: v6e:2x2x1
jax: 0.10.0
libtpu: 0.0.40
codegen_flags: <defaults>
</compile_context>

<pallas_src>
import functools

import jax
import jax.numpy as jnp
from jax import lax
from jax.experimental import pallas as pl
from jax.experimental.pallas import tpu as pltpu


def _smooth_l1(d):
    a = jnp.abs(d)
    return jnp.where(a < 1.0, 0.5 * d * d, a - 0.5)


def _loss_kernel(ploc_ref, gloc_ref, plabel_ref, glabel_ref, dbox_ref, out_ref,
                 con_scr, sl1_scr, lab_scr, *, scale_xy, scale_wh, d_valid):
    B, _, D = ploc_ref.shape
    C = plabel_ref.shape[1]
    f32 = jnp.float32

    # Grid-invariant values, hoisted out of the per-sample loop.
    db = dbox_ref[0]                           # (4, D): [xy ; 1/wh]
    db_xy = db[0:2]
    db_iwh = db[2:4]                           # reciprocal precomputed in wrapper
    cls_iota = lax.broadcasted_iota(jnp.int32, (C, D), 0)

    # ---- per-sample (4,D)/(C,D) work; rows stored into VMEM scratch --------
    # (static row stores; no broadcast/select placement)
    for b in range(B):                         # B <= 8, statically unrolled
        plb = ploc_ref[b].astype(f32)          # (4, D)
        glb = gloc_ref[b].astype(f32)          # (4, D)
        pcb = plabel_ref[b].astype(f32)        # (C, D)
        lab_b = glabel_ref[b]                  # (1, D) int32
        mask_b = lab_b > 0

        # localization target (_loc_vec) + SmoothL1 (beta = 1), masked.
        gxy = scale_xy * (glb[0:2] - db_xy) * db_iwh
        gwh = scale_wh * jnp.log(glb[2:4] * db_iwh)
        sl1_box = (jnp.sum(_smooth_l1(plb[0:2] - gxy), axis=0, keepdims=True)
                   + jnp.sum(_smooth_l1(plb[2:4] - gwh), axis=0, keepdims=True))
        sl1_scr[pl.ds(b, 1), :] = jnp.where(mask_b, sl1_box, 0.0)

        # per-box cross entropy: logsumexp - logit[target].
        mx = jnp.max(pcb, axis=0, keepdims=True)
        lse = mx + jnp.log(jnp.sum(jnp.exp(pcb - mx), axis=0, keepdims=True))
        picked = jnp.sum(jnp.where(cls_iota == lab_b, pcb, 0.0),
                         axis=0, keepdims=True)
        con_scr[pl.ds(b, 1), :] = lse - picked
        lab_scr[pl.ds(b, 1), :] = lab_b

    # ---- batched phase over the (B, D) scratch ------------------------------
    lab = lab_scr[...]                                       # (B, D) int32
    con = con_scr[...]                                       # (B, D) f32
    lane = lax.broadcasted_iota(jnp.int32, (B, D), 1)

    mask = lab > 0                                           # pad lanes: label 0
    maskf = mask.astype(f32)
    pos_i = jnp.sum(mask.astype(jnp.int32), axis=-1, keepdims=True)   # (B, 1)
    sl1 = jnp.sum(sl1_scr[...], axis=-1, keepdims=True)               # (B, 1)

    # ---- hard negative mining (no D x D materialization) --------------------
    con_neg = jnp.where(mask, 0.0, con)
    if d_valid != D:                                         # static: pad lanes
        lane_ok = lane < d_valid
        con_neg = jnp.where(lane_ok, con_neg, 0.0)           # pads tie at 0 (last)
        con = jnp.where(lane_ok, con, 0.0)                   # pads add 0 to closs
    con_neg = jnp.maximum(con_neg, 0.0)        # bit order == value order, always

    k = jnp.minimum(3 * pos_i, jnp.int32(d_valid))           # (B, 1)
    con_bits = pltpu.bitcast(con_neg, jnp.int32)             # monotone for x >= 0
    hi0 = jnp.max(con_bits, axis=-1, keepdims=True) + 1      # tighter than +inf

    # (1) bisection on the bit pattern: T = k-th largest value of con_neg.
    def val_body(_, carry):
        lo, hi = carry
        mid = lo + jnp.right_shift(hi - lo, 1)
        cnt = jnp.sum((con_bits >= mid).astype(jnp.int32), axis=-1,
                      keepdims=True)
        ge = cnt >= k
        return jnp.where(ge, mid, lo), jnp.where(ge, hi, mid)

    t_bits, _ = lax.fori_loop(0, 31, val_body,
                              (jnp.zeros((B, 1), jnp.int32), hi0))

    gt = con_bits > t_bits
    eq = con_bits == t_bits
    n_gt = jnp.sum(gt.astype(jnp.int32), axis=-1, keepdims=True)
    need = k - n_gt                                          # (B, 1), >= 0

    # (2) bisection on lane index: stable tie-break among values equal to T.
    def idx_body(_, carry):
        lo, hi = carry
        mid = lo + jnp.right_shift(hi - lo, 1)
        cnt = jnp.sum((eq & (lane < mid)).astype(jnp.int32), axis=-1,
                      keepdims=True)
        ge = cnt >= need
        return jnp.where(ge, lo, mid), jnp.where(ge, mid, hi)

    idx_iters = max(1, (D - 1).bit_length()) + 1
    _, i_cut = lax.fori_loop(
        0, idx_iters, idx_body,
        (jnp.zeros((B, 1), jnp.int32), jnp.full((B, 1), D, jnp.int32)))
    i_cut = jnp.where(need > 0, i_cut, 0)

    neg_mask = gt | (eq & (lane < i_cut))
    closs = jnp.sum(con * (maskf + neg_mask.astype(f32)),
                    axis=-1, keepdims=True)                  # (B, 1)
    # TODO(synk): on v7x the cross-lane sums (here and in the bisections) could
    # be offloaded to the idle MXU if profiling shows VALU/XLU as binding slot.

    # ---- combine / normalize -------------------------------------------------
    total = sl1 + closs
    pos_f = pos_i.astype(f32)
    num_maskf = (pos_i > 0).astype(f32)
    per_sample = total * num_maskf / jnp.maximum(pos_f, 1e-6)        # (B, 1)

    out_ref[0] = jnp.broadcast_to(per_sample, (B, 128)).astype(out_ref.dtype)


def ssd_loss_pallas(ploc, plabel, gloc, glabel, dboxes, scale_xy, scale_wh):
    N, _, D = ploc.shape
    C = plabel.shape[1]

    # Inputs keep their native dtype (bf16 halves the dominant HBM stream);
    # casts to f32 happen per-tile inside the kernel.
    glabel3 = glabel.astype(jnp.int32)[:, None, :]        # (N, 1, D)
    dboxes = dboxes.astype(jnp.float32)

    # Pad the anchor (lane) axis to a multiple of 128 -> lane-dense blocks.
    d_pad = ((D + 127) // 128) * 128
    if d_pad != D:
        padw = ((0, 0), (0, 0), (0, d_pad - D))
        ploc = jnp.pad(ploc, padw)
        gloc = jnp.pad(gloc, padw, constant_values=1.0)   # keep log() finite
        plabel = jnp.pad(plabel, padw)
        dboxes = jnp.pad(dboxes, padw, constant_values=1.0)
        glabel3 = jnp.pad(glabel3, padw)                  # background label

    # Hoist the default-box reciprocal (grid-invariant): [xy ; 1/wh].
    db_prep = jnp.concatenate([dboxes[:, :2, :], 1.0 / dboxes[:, 2:, :]], axis=1)

    # ---- size B (samples per grid step) from the device VMEM capacity ------
    vmem_cap = 64 << 20                                   # v7x per-TC fallback
    try:
        vmem_cap = int(pltpu.get_tpu_info().vmem_capacity_bytes)
    except Exception:
        pass

    loc_b = jnp.dtype(ploc.dtype).itemsize
    gl_b = jnp.dtype(gloc.dtype).itemsize
    pl_b = jnp.dtype(plabel.dtype).itemsize

    def vmem_need(b):
        blocks = (b * 4 * d_pad * (loc_b + gl_b)          # ploc + gloc
                  + b * C * d_pad * pl_b                  # plabel
                  + b * d_pad * 4                         # glabel (int32)
                  + 4 * d_pad * 4                         # dboxes
                  + b * 128 * 4)                          # output
        scratch = 3 * b * d_pad * 4                       # con / sl1 / lab rows
        ce_tmp = 5 * C * d_pad * 4                        # per-sample CE slabs
        loc_tmp = 8 * 4 * d_pad * 4                       # per-sample loc slabs
        mine_tmp = 12 * b * d_pad * 4                     # (B, D) mining temps
        return 2 * blocks + scratch + ce_tmp + loc_tmp + mine_tmp

    B = min(N, 8)
    while B > 1 and vmem_need(B) > int(vmem_cap * 0.75):
        B //= 2
    if N >= 4:                      # keep >= 2 grid steps so the "parallel"
        B = min(B, max(1, N // 2))  # axis can split across v7x TensorCores

    n_pad = ((N + B - 1) // B) * B
    if n_pad != N:
        pn = ((0, n_pad - N), (0, 0), (0, 0))
        ploc = jnp.pad(ploc, pn)
        gloc = jnp.pad(gloc, pn, constant_values=1.0)
        plabel = jnp.pad(plabel, pn)
        glabel3 = jnp.pad(glabel3, pn)                    # label 0 -> zero loss
    G = n_pad // B

    kernel = functools.partial(_loss_kernel, scale_xy=float(scale_xy),
                               scale_wh=float(scale_wh), d_valid=D)
    per_sample = pl.pallas_call(
        kernel,
        out_shape=jax.ShapeDtypeStruct((G, B, 128), jnp.float32),
        grid_spec=pltpu.PrefetchScalarGridSpec(
            num_scalar_prefetch=0,
            grid=(G,),
            in_specs=[
                pl.BlockSpec((B, 4, d_pad), lambda g: (g, 0, 0)),   # ploc
                pl.BlockSpec((B, 4, d_pad), lambda g: (g, 0, 0)),   # gloc
                pl.BlockSpec((B, C, d_pad), lambda g: (g, 0, 0)),   # plabel
                pl.BlockSpec((B, 1, d_pad), lambda g: (g, 0, 0)),   # glabel
                pl.BlockSpec((1, 4, d_pad), lambda g: (0, 0, 0)),   # dboxes
            ],
            out_specs=pl.BlockSpec((1, B, 128), lambda g: (g, 0, 0)),
            scratch_shapes=[pltpu.VMEM((B, d_pad), jnp.float32),    # con rows
                            pltpu.VMEM((B, d_pad), jnp.float32),    # sl1 rows
                            pltpu.VMEM((B, d_pad), jnp.int32)],     # label rows
        ),
        compiler_params=pltpu.CompilerParams(
            dimension_semantics=("parallel",),
            vmem_limit_bytes=int(vmem_cap * 0.85),
        ),
    )(ploc, gloc, plabel, glabel3, db_prep)

    per_sample = per_sample.reshape(n_pad, 128)[:N, 0]
    return jnp.mean(per_sample)          # mean over batch (dim=0), as in PyTorch


def ssd_loss_ref(ploc, plabel, gloc, glabel, dboxes, scale_xy, scale_wh):
    """Pure-JAX reference matching the PyTorch forward."""
    f32 = jnp.float32
    mask = glabel > 0
    pos_num = mask.sum(axis=1)
    gxy = scale_xy * (gloc[:, :2, :] - dboxes[:, :2, :]) / dboxes[:, 2:, :]
    gwh = scale_wh * jnp.log(gloc[:, 2:, :] / dboxes[:, 2:, :])
    vec_gd = jnp.concatenate([gxy, gwh], axis=1)
    d = ploc - vec_gd
    a = jnp.abs(d)
    sl1_e = jnp.where(a < 1.0, 0.5 * d * d, a - 0.5)
    sl1 = (mask.astype(f32) * sl1_e.sum(axis=1)).sum(axis=1)
    lse = jax.scipy.special.logsumexp(plabel, axis=1)
    picked = jnp.take_along_axis(plabel, glabel[:, None, :], axis=1)[:, 0, :]
    con = lse - picked
    con_neg = jnp.where(mask, 0.0, con)
    con_idx = jnp.argsort(-con_neg, axis=1, stable=True)
    con_rank = jnp.argsort(con_idx, axis=1, stable=True)
    neg_num = jnp.minimum(3 * pos_num, mask.shape[1])[:, None]
    neg_mask = con_rank < neg_num
    closs = (con * (mask.astype(f32) + neg_mask.astype(f32))).sum(axis=1)
    total = sl1 + closs
    num_mask = (pos_num > 0).astype(f32)
    posc = jnp.maximum(pos_num.astype(f32), 1e-6)
    return (total * num_mask / posc).mean()


if __name__ == "__main__":
    # Small, TPU-friendly shapes: batch N=2, classes C=8, boxes D=256 (vs 8732).
    N, C, D = 2, 8, 256
    scale_xy = 10.0   # 1 / 0.1
    scale_wh = 5.0    # 1 / 0.2

    key = jax.random.PRNGKey(0)
    k1, k2, k3, k4, k5, k6, k7 = jax.random.split(key, 7)

    # default boxes in xywh (w, h strictly positive)
    db_xy = jax.random.uniform(k1, (1, 2, D), jnp.float32, 0.05, 0.95)
    db_wh = jax.random.uniform(k2, (1, 2, D), jnp.float32, 0.1, 0.9)
    dboxes = jnp.concatenate([db_xy, db_wh], axis=1)

    ploc = jax.random.normal(k3, (N, 4, D), jnp.float32)
    plabel = jax.random.normal(k4, (N, C, D), jnp.float32)

    g_xy = jax.random.uniform(k5, (N, 2, D), jnp.float32, 0.05, 0.95)
    g_wh = jax.random.uniform(k6, (N, 2, D), jnp.float32, 0.1, 0.9)
    gloc = jnp.concatenate([g_xy, g_wh], axis=1)

    # ~10% positive boxes; class 0 = background
    is_pos = jax.random.uniform(k7, (N, D)) < 0.1
    cls = jax.random.randint(jax.random.fold_in(key, 99), (N, D), 1, C)
    glabel = jnp.where(is_pos, cls, 0).astype(jnp.int32)

    out = ssd_loss_pallas(ploc, plabel, gloc, glabel, dboxes, scale_xy, scale_wh)
    out = jax.block_until_ready(out)

    ref = ssd_loss_ref(ploc, plabel, gloc, glabel, dboxes, scale_xy, scale_wh)
    assert jnp.allclose(out, ref, rtol=1e-3, atol=1e-3), (out, ref)

    print("KERNEL_OK")
</pallas_src>

<mosaic_0001>
module attributes {stable_mosaic.version = 11 : i64} {
  func.func @_loss_kernel(%arg0: i32, %arg1: memref<2x4x256xf32, #tpu.memory_space<vmem>>, %arg2: memref<2x4x256xf32, #tpu.memory_space<vmem>>, %arg3: memref<2x8x256xf32, #tpu.memory_space<vmem>>, %arg4: memref<2x1x256xi32, #tpu.memory_space<vmem>>, %arg5: memref<1x4x256xf32, #tpu.memory_space<vmem>>, %arg6: memref<1x2x128xf32, #tpu.memory_space<vmem>>, %arg7: memref<2x256xf32, #tpu.memory_space<vmem>>, %arg8: memref<2x256xf32, #tpu.memory_space<vmem>>, %arg9: memref<2x256xi32, #tpu.memory_space<vmem>>) attributes {dimension_semantics = [#tpu.dimension_semantics<parallel>], iteration_bounds = array<i64: 1>, scalar_prefetch = 0 : i64, scratch_operands = 3 : i64, tpu.core_type = #tpu.core_type<tc>, window_params = [{transform_indices = @transform_0, window_bounds = array<i64: 2, 4, 256>}, {transform_indices = @transform_1, window_bounds = array<i64: 2, 4, 256>}, {transform_indices = @transform_2, window_bounds = array<i64: 2, 8, 256>}, {transform_indices = @transform_3, window_bounds = array<i64: 2, 1, 256>}, {pipeline_mode = #tpu.pipeline_mode<synchronous>, transform_indices = @transform_4, window_bounds = array<i64: 1, 4, 256>}, {transform_indices = @transform_5, window_bounds = array<i64: 1, 2, 128>}]} {
    %c0 = arith.constant 0 : index
    %c0_0 = arith.constant 0 : index
    %c0_1 = arith.constant 0 : index
    %0 = vector.load %arg5[%c0, %c0_0, %c0_1] : memref<1x4x256xf32, #tpu.memory_space<vmem>>, vector<1x4x256xf32>
    %1 = vector.shape_cast %0 : vector<1x4x256xf32> to vector<4x256xf32>
    %2 = vector.extract_strided_slice %1 {offsets = [0, 0], sizes = [2, 256], strides = [1, 1]} : vector<4x256xf32> to vector<2x256xf32>
    %3 = vector.extract_strided_slice %1 {offsets = [2, 0], sizes = [2, 256], strides = [1, 1]} : vector<4x256xf32> to vector<2x256xf32>
    %4 = tpu.iota {dimensions = array<i32: 0>} : vector<8x256xi32>
    %c0_2 = arith.constant 0 : index
    %c0_3 = arith.constant 0 : index
    %c0_4 = arith.constant 0 : index
    %5 = vector.load %arg1[%c0_2, %c0_3, %c0_4] : memref<2x4x256xf32, #tpu.memory_space<vmem>>, vector<1x4x256xf32>
    %6 = vector.shape_cast %5 : vector<1x4x256xf32> to vector<4x256xf32>
    %c0_5 = arith.constant 0 : index
    %c0_6 = arith.constant 0 : index
    %c0_7 = arith.constant 0 : index
    %7 = vector.load %arg2[%c0_5, %c0_6, %c0_7] : memref<2x4x256xf32, #tpu.memory_space<vmem>>, vector<1x4x256xf32>
    %8 = vector.shape_cast %7 : vector<1x4x256xf32> to vector<4x256xf32>
    %c0_8 = arith.constant 0 : index
    %c0_9 = arith.constant 0 : index
    %c0_10 = arith.constant 0 : index
    %9 = vector.load %arg3[%c0_8, %c0_9, %c0_10] : memref<2x8x256xf32, #tpu.memory_space<vmem>>, vector<1x8x256xf32>
    %10 = vector.shape_cast %9 : vector<1x8x256xf32> to vector<8x256xf32>
    %c0_11 = arith.constant 0 : index
    %c0_12 = arith.constant 0 : index
    %c0_13 = arith.constant 0 : index
    %11 = vector.load %arg4[%c0_11, %c0_12, %c0_13] : memref<2x1x256xi32, #tpu.memory_space<vmem>>, vector<1x1x256xi32>
    %12 = vector.shape_cast %11 : vector<1x1x256xi32> to vector<1x256xi32>
    %c0_i32 = arith.constant 0 : i32
    %13 = vector.broadcast %c0_i32 : i32 to vector<1x256xi32>
    %14 = arith.cmpi sgt, %12, %13 : vector<1x256xi32>
    %15 = vector.extract_strided_slice %8 {offsets = [0, 0], sizes = [2, 256], strides = [1, 1]} : vector<4x256xf32> to vector<2x256xf32>
    %16 = arith.subf %15, %2 : vector<2x256xf32>
    %cst = arith.constant 1.000000e+01 : f32
    %17 = vector.broadcast %cst : f32 to vector<2x256xf32>
    %18 = arith.mulf %17, %16 : vector<2x256xf32>
    %19 = arith.mulf %18, %3 : vector<2x256xf32>
    %20 = vector.extract_strided_slice %8 {offsets = [2, 0], sizes = [2, 256], strides = [1, 1]} : vector<4x256xf32> to vector<2x256xf32>
    %21 = arith.mulf %20, %3 : vector<2x256xf32>
    %22 = math.log %21 : vector<2x256xf32>
    %cst_14 = arith.constant 5.000000e+00 : f32
    %23 = vector.broadcast %cst_14 : f32 to vector<2x256xf32>
    %24 = arith.mulf %23, %22 : vector<2x256xf32>
    %25 = vector.extract_strided_slice %6 {offsets = [0, 0], sizes = [2, 256], strides = [1, 1]} : vector<4x256xf32> to vector<2x256xf32>
    %26 = arith.subf %25, %19 : vector<2x256xf32>
    %27 = math.absf %26 : vector<2x256xf32>
    %cst_15 = arith.constant 1.000000e+00 : f32
    %28 = vector.broadcast %cst_15 : f32 to vector<2x256xf32>
    %29 = arith.cmpf olt, %27, %28 : vector<2x256xf32>
    %cst_16 = arith.constant 5.000000e-01 : f32
    %30 = vector.broadcast %cst_16 : f32 to vector<2x256xf32>
    %31 = arith.mulf %30, %26 : vector<2x256xf32>
    %32 = arith.mulf %31, %26 : vector<2x256xf32>
    %cst_17 = arith.constant 5.000000e-01 : f32
    %33 = vector.broadcast %cst_17 : f32 to vector<2x256xf32>
    %34 = arith.subf %27, %33 : vector<2x256xf32>
    %35 = arith.select %29, %32, %34 : vector<2x256xi1>, vector<2x256xf32>
    %cst_18 = arith.constant dense<0.000000e+00> : vector<256xf32>
    %36 = vector.multi_reduction <add>, %35, %cst_18 [0] : vector<2x256xf32> to vector<256xf32>
    %37 = vector.shape_cast %36 : vector<256xf32> to vector<1x256xf32>
    %38 = vector.extract_strided_slice %6 {offsets = [2, 0], sizes = [2, 256], strides = [1, 1]} : vector<4x256xf32> to vector<2x256xf32>
    %39 = arith.subf %38, %24 : vector<2x256xf32>
    %40 = math.absf %39 : vector<2x256xf32>
    %cst_19 = arith.constant 1.000000e+00 : f32
    %41 = vector.broadcast %cst_19 : f32 to vector<2x256xf32>
    %42 = arith.cmpf olt, %40, %41 : vector<2x256xf32>
    %cst_20 = arith.constant 5.000000e-01 : f32
    %43 = vector.broadcast %cst_20 : f32 to vector<2x256xf32>
    %44 = arith.mulf %43, %39 : vector<2x256xf32>
    %45 = arith.mulf %44, %39 : vector<2x256xf32>
    %cst_21 = arith.constant 5.000000e-01 : f32
    %46 = vector.broadcast %cst_21 : f32 to vector<2x256xf32>
    %47 = arith.subf %40, %46 : vector<2x256xf32>
    %48 = arith.select %42, %45, %47 : vector<2x256xi1>, vector<2x256xf32>
    %cst_22 = arith.constant dense<0.000000e+00> : vector<256xf32>
    %49 = vector.multi_reduction <add>, %48, %cst_22 [0] : vector<2x256xf32> to vector<256xf32>
    %50 = vector.shape_cast %49 : vector<256xf32> to vector<1x256xf32>
    %51 = arith.addf %37, %50 : vector<1x256xf32>
    %cst_23 = arith.constant 0.000000e+00 : f32
    %52 = vector.broadcast %cst_23 : f32 to vector<1x256xf32>
    %53 = arith.select %14, %51, %52 : vector<1x256xi1>, vector<1x256xf32>
    %c0_24 = arith.constant 0 : index
    %c0_25 = arith.constant 0 : index
    %54 = vector.load %arg8[%c0_24, %c0_25] : memref<2x256xf32, #tpu.memory_space<vmem>>, vector<1x256xf32>
    tpu.vector_store %arg8[%c0_24, %c0_25], %53 {strides = array<i32>} : memref<2x256xf32, #tpu.memory_space<vmem>>, vector<1x256xf32>,
    %cst_26 = arith.constant dense<0xFF800000> : vector<256xf32>
    %55 = vector.multi_reduction <maximumf>, %10, %cst_26 [0] : vector<8x256xf32> to vector<256xf32>
    %56 = vector.shape_cast %55 : vector<256xf32> to vector<1x256xf32>
    %57 = vector.broadcast %56 : vector<1x256xf32> to vector<8x256xf32>
    %58 = arith.subf %10, %57 : vector<8x256xf32>
    %59 = math.exp %58 : vector<8x256xf32>
    %cst_27 = arith.constant dense<0.000000e+00> : vector<256xf32>
    %60 = vector.multi_reduction <add>, %59, %cst_27 [0] : vector<8x256xf32> to vector<256xf32>
    %61 = vector.shape_cast %60 : vector<256xf32> to vector<1x256xf32>
    %62 = math.log %61 : vector<1x256xf32>
    %63 = arith.addf %56, %62 : vector<1x256xf32>
    %64 = vector.broadcast %12 : vector<1x256xi32> to vector<8x256xi32>
    %65 = arith.cmpi eq, %4, %64 : vector<8x256xi32>
    %cst_28 = arith.constant 0.000000e+00 : f32
    %66 = vector.broadcast %cst_28 : f32 to vector<8x256xf32>
    %67 = arith.select %65, %10, %66 : vector<8x256xi1>, vector<8x256xf32>
    %cst_29 = arith.constant dense<0.000000e+00> : vector<256xf32>
    %68 = vector.multi_reduction <add>, %67, %cst_29 [0] : vector<8x256xf32> to vector<256xf32>
    %69 = vector.shape_cast %68 : vector<256xf32> to vector<1x256xf32>
    %70 = arith.subf %63, %69 : vector<1x256xf32>
    %c0_30 = arith.constant 0 : index
    %c0_31 = arith.constant 0 : index
    %71 = vector.load %arg7[%c0_30, %c0_31] : memref<2x256xf32, #tpu.memory_space<vmem>>, vector<1x256xf32>
    tpu.vector_store %arg7[%c0_30, %c0_31], %70 {strides = array<i32>} : memref<2x256xf32, #tpu.memory_space<vmem>>, vector<1x256xf32>,
    %c0_32 = arith.constant 0 : index
    %c0_33 = arith.constant 0 : index
    %72 = vector.load %arg9[%c0_32, %c0_33] : memref<2x256xi32, #tpu.memory_space<vmem>>, vector<1x256xi32>
    tpu.vector_store %arg9[%c0_32, %c0_33], %12 {strides = array<i32>} : memref<2x256xi32, #tpu.memory_space<vmem>>, vector<1x256xi32>,
    %c1 = arith.constant 1 : index
    %c0_34 = arith.constant 0 : index
    %c0_35 = arith.constant 0 : index
    %73 = vector.load %arg1[%c1, %c0_34, %c0_35] : memref<2x4x256xf32, #tpu.memory_space<vmem>>, vector<1x4x256xf32>
    %74 = vector.shape_cast %73 : vector<1x4x256xf32> to vector<4x256xf32>
    %c1_36 = arith.constant 1 : index
    %c0_37 = arith.constant 0 : index
    %c0_38 = arith.constant 0 : index
    %75 = vector.load %arg2[%c1_36, %c0_37, %c0_38] : memref<2x4x256xf32, #tpu.memory_space<vmem>>, vector<1x4x256xf32>
    %76 = vector.shape_cast %75 : vector<1x4x256xf32> to vector<4x256xf32>
    %c1_39 = arith.constant 1 : index
    %c0_40 = arith.constant 0 : index
    %c0_41 = arith.constant 0 : index
    %77 = vector.load %arg3[%c1_39, %c0_40, %c0_41] : memref<2x8x256xf32, #tpu.memory_space<vmem>>, vector<1x8x256xf32>
    %78 = vector.shape_cast %77 : vector<1x8x256xf32> to vector<8x256xf32>
    %c1_42 = arith.constant 1 : index
    %c0_43 = arith.constant 0 : index
    %c0_44 = arith.constant 0 : index
    %79 = vector.load %arg4[%c1_42, %c0_43, %c0_44] : memref<2x1x256xi32, #tpu.memory_space<vmem>>, vector<1x1x256xi32>
    %80 = vector.shape_cast %79 : vector<1x1x256xi32> to vector<1x256xi32>
    %c0_i32_45 = arith.constant 0 : i32
    %81 = vector.broadcast %c0_i32_45 : i32 to vector<1x256xi32>
    %82 = arith.cmpi sgt, %80, %81 : vector<1x256xi32>
    %83 = vector.extract_strided_slice %76 {offsets = [0, 0], sizes = [2, 256], strides = [1, 1]} : vector<4x256xf32> to vector<2x256xf32>
    %84 = arith.subf %83, %2 : vector<2x256xf32>
    %cst_46 = arith.constant 1.000000e+01 : f32
    %85 = vector.broadcast %cst_46 : f32 to vector<2x256xf32>
    %86 = arith.mulf %85, %84 : vector<2x256xf32>
    %87 = arith.mulf %86, %3 : vector<2x256xf32>
    %88 = vector.extract_strided_slice %76 {offsets = [2, 0], sizes = [2, 256], strides = [1, 1]} : vector<4x256xf32> to vector<2x256xf32>
    %89 = arith.mulf %88, %3 : vector<2x256xf32>
    %90 = math.log %89 : vector<2x256xf32>
    %cst_47 = arith.constant 5.000000e+00 : f32
    %91 = vector.broadcast %cst_47 : f32 to vector<2x256xf32>
    %92 = arith.mulf %91, %90 : vector<2x256xf32>
    %93 = vector.extract_strided_slice %74 {offsets = [0, 0], sizes = [2, 256], strides = [1, 1]} : vector<4x256xf32> to vector<2x256xf32>
    %94 = arith.subf %93, %87 : vector<2x256xf32>
    %95 = math.absf %94 : vector<2x256xf32>
    %cst_48 = arith.constant 1.000000e+00 : f32
    %96 = vector.broadcast %cst_48 : f32 to vector<2x256xf32>
    %97 = arith.cmpf olt, %95, %96 : vector<2x256xf32>
    %cst_49 = arith.constant 5.000000e-01 : f32
    %98 = vector.broadcast %cst_49 : f32 to vector<2x256xf32>
    %99 = arith.mulf %98, %94 : vector<2x256xf32>
    %100 = arith.mulf %99, %94 : vector<2x256xf32>
    %cst_50 = arith.constant 5.000000e-01 : f32
    %101 = vector.broadcast %cst_50 : f32 to vector<2x256xf32>
    %102 = arith.subf %95, %101 : vector<2x256xf32>
    %103 = arith.select %97, %100, %102 : vector<2x256xi1>, vector<2x256xf32>
    %cst_51 = arith.constant dense<0.000000e+00> : vector<256xf32>
    %104 = vector.multi_reduction <add>, %103, %cst_51 [0] : vector<2x256xf32> to vector<256xf32>
    %105 = vector.shape_cast %104 : vector<256xf32> to vector<1x256xf32>
    %106 = vector.extract_strided_slice %74 {offsets = [2, 0], sizes = [2, 256], strides = [1, 1]} : vector<4x256xf32> to vector<2x256xf32>
    %107 = arith.subf %106, %92 : vector<2x256xf32>
    %108 = math.absf %107 : vector<2x256xf32>
    %cst_52 = arith.constant 1.000000e+00 : f32
    %109 = vector.broadcast %cst_52 : f32 to vector<2x256xf32>
    %110 = arith.cmpf olt, %108, %109 : vector<2x256xf32>
    %cst_53 = arith.constant 5.000000e-01 : f32
    %111 = vector.broadcast %cst_53 : f32 to vector<2x256xf32>
    %112 = arith.mulf %111, %107 : vector<2x256xf32>
    %113 = arith.mulf %112, %107 : vector<2x256xf32>
    %cst_54 = arith.constant 5.000000e-01 : f32
    %114 = vector.broadcast %cst_54 : f32 to vector<2x256xf32>
    %115 = arith.subf %108, %114 : vector<2x256xf32>
    %116 = arith.select %110, %113, %115 : vector<2x256xi1>, vector<2x256xf32>
    %cst_55 = arith.constant dense<0.000000e+00> : vector<256xf32>
    %117 = vector.multi_reduction <add>, %116, %cst_55 [0] : vector<2x256xf32> to vector<256xf32>
    %118 = vector.shape_cast %117 : vector<256xf32> to vector<1x256xf32>
    %119 = arith.addf %105, %118 : vector<1x256xf32>
    %cst_56 = arith.constant 0.000000e+00 : f32
    %120 = vector.broadcast %cst_56 : f32 to vector<1x256xf32>
    %121 = arith.select %82, %119, %120 : vector<1x256xi1>, vector<1x256xf32>
    %c1_57 = arith.constant 1 : index
    %c0_58 = arith.constant 0 : index
    %122 = vector.load %arg8[%c1_57, %c0_58] : memref<2x256xf32, #tpu.memory_space<vmem>>, vector<1x256xf32>
    tpu.vector_store %arg8[%c1_57, %c0_58], %121 {strides = array<i32>} : memref<2x256xf32, #tpu.memory_space<vmem>>, vector<1x256xf32>,
    %cst_59 = arith.constant dense<0xFF800000> : vector<256xf32>
    %123 = vector.multi_reduction <maximumf>, %78, %cst_59 [0] : vector<8x256xf32> to vector<256xf32>
    %124 = vector.shape_cast %123 : vector<256xf32> to vector<1x256xf32>
    %125 = vector.broadcast %124 : vector<1x256xf32> to vector<8x256xf32>
    %126 = arith.subf %78, %125 : vector<8x256xf32>
    %127 = math.exp %126 : vector<8x256xf32>
    %cst_60 = arith.constant dense<0.000000e+00> : vector<256xf32>
    %128 = vector.multi_reduction <add>, %127, %cst_60 [0] : vector<8x256xf32> to vector<256xf32>
    %129 = vector.shape_cast %128 : vector<256xf32> to vector<1x256xf32>
    %130 = math.log %129 : vector<1x256xf32>
    %131 = arith.addf %124, %130 : vector<1x256xf32>
    %132 = vector.broadcast %80 : vector<1x256xi32> to vector<8x256xi32>
    %133 = arith.cmpi eq, %4, %132 : vector<8x256xi32>
    %cst_61 = arith.constant 0.000000e+00 : f32
    %134 = vector.broadcast %cst_61 : f32 to vector<8x256xf32>
    %135 = arith.select %133, %78, %134 : vector<8x256xi1>, vector<8x256xf32>
    %cst_62 = arith.constant dense<0.000000e+00> : vector<256xf32>
    %136 = vector.multi_reduction <add>, %135, %cst_62 [0] : vector<8x256xf32> to vector<256xf32>
    %137 = vector.shape_cast %136 : vector<256xf32> to vector<1x256xf32>
    %138 = arith.subf %131, %137 : vector<1x256xf32>
    %c1_63 = arith.constant 1 : index
    %c0_64 = arith.constant 0 : index
    %139 = vector.load %arg7[%c1_63, %c0_64] : memref<2x256xf32, #tpu.memory_space<vmem>>, vector<1x256xf32>
    tpu.vector_store %arg7[%c1_63, %c0_64], %138 {strides = array<i32>} : memref<2x256xf32, #tpu.memory_space<vmem>>, vector<1x256xf32>,
    %c1_65 = arith.constant 1 : index
    %c0_66 = arith.constant 0 : index
    %140 = vector.load %arg9[%c1_65, %c0_66] : memref<2x256xi32, #tpu.memory_space<vmem>>, vector<1x256xi32>
    tpu.vector_store %arg9[%c1_65, %c0_66], %80 {strides = array<i32>} : memref<2x256xi32, #tpu.memory_space<vmem>>, vector<1x256xi32>,
    %c0_67 = arith.constant 0 : index
    %c0_68 = arith.constant 0 : index
    %141 = vector.load %arg9[%c0_67, %c0_68] : memref<2x256xi32, #tpu.memory_space<vmem>>, vector<2x256xi32>
    %c0_69 = arith.constant 0 : index
    %c0_70 = arith.constant 0 : index
    %142 = vector.load %arg7[%c0_69, %c0_70] : memref<2x256xf32, #tpu.memory_space<vmem>>, vector<2x256xf32>
    %143 = tpu.iota {dimensions = array<i32: 1>} : vector<2x256xi32>
    %c0_i32_71 = arith.constant 0 : i32
    %144 = vector.broadcast %c0_i32_71 : i32 to vector<2x256xi32>
    %145 = arith.cmpi sgt, %141, %144 : vector<2x256xi32>
    %146 = arith.extui %145 : vector<2x256xi1> to vector<2x256xi32>
    %147 = arith.sitofp %146 : vector<2x256xi32> to vector<2x256xf32>
    %148 = arith.extui %145 : vector<2x256xi1> to vector<2x256xi32>
    %cst_72 = arith.constant dense<0> : vector<2xi32>
    %149 = vector.multi_reduction <add>, %148, %cst_72 [1] : vector<2x256xi32> to vector<2xi32>
    %150 = vector.shape_cast %149 : vector<2xi32> to vector<2x1xi32>
    %c0_73 = arith.constant 0 : index
    %c0_74 = arith.constant 0 : index
    %151 = vector.load %arg8[%c0_73, %c0_74] : memref<2x256xf32, #tpu.memory_space<vmem>>, vector<2x256xf32>
    %cst_75 = arith.constant dense<0.000000e+00> : vector<2xf32>
    %152 = vector.multi_reduction <add>, %151, %cst_75 [1] : vector<2x256xf32> to vector<2xf32>
    %153 = vector.shape_cast %152 : vector<2xf32> to vector<2x1xf32>
    %cst_76 = arith.constant 0.000000e+00 : f32
    %154 = vector.broadcast %cst_76 : f32 to vector<2x256xf32>
    %155 = arith.select %145, %154, %142 : vector<2x256xi1>, vector<2x256xf32>
    %cst_77 = arith.constant 0.000000e+00 : f32
    %156 = vector.broadcast %cst_77 : f32 to vector<2x256xf32>
    %157 = arith.maximumf %155, %156 : vector<2x256xf32>
    %c3_i32 = arith.constant 3 : i32
    %158 = vector.broadcast %c3_i32 : i32 to vector<2x1xi32>
    %159 = arith.muli %158, %150 : vector<2x1xi32>
    %c256_i32 = arith.constant 256 : i32
    %160 = vector.broadcast %c256_i32 : i32 to vector<2x1xi32>
    %161 = arith.minsi %159, %160 : vector<2x1xi32>
    %162 = tpu.bitcast %157 : vector<2x256xf32> -> vector<2x256xi32>
    %cst_78 = arith.constant dense<-2147483648> : vector<2xi32>
    %163 = vector.multi_reduction <maxsi>, %162, %cst_78 [1] : vector<2x256xi32> to vector<2xi32>
    %164 = vector.shape_cast %163 : vector<2xi32> to vector<2x1xi32>
    %c1_i32 = arith.constant 1 : i32
    %165 = vector.broadcast %c1_i32 : i32 to vector<2x1xi32>
    %166 = arith.addi %164, %165 : vector<2x1xi32>
    %c0_i32_79 = arith.constant 0 : i32
    %167 = vector.broadcast %c0_i32_79 : i32 to vector<2x1xi32>
    %c0_i32_80 = arith.constant 0 : i32
    %c31_i32 = arith.constant 31 : i32
    %168 = arith.addi %c0_i32_80, %c31_i32 : i32
    %c1_i32_81 = arith.constant 1 : i32
    %169:2 = scf.for %arg10 = %c0_i32_80 to %168 step %c1_i32_81 iter_args(%arg11 = %167, %arg12 = %166) -> (vector<2x1xi32>, vector<2x1xi32>)  : i32 {
      %211 = arith.subi %arg12, %arg11 : vector<2x1xi32>
      %c1_i32_95 = arith.constant 1 : i32
      %212 = vector.broadcast %c1_i32_95 : i32 to vector<2x1xi32>
      %213 = arith.shrsi %211, %212 : vector<2x1xi32>
      %214 = arith.addi %arg11, %213 : vector<2x1xi32>
      %215 = vector.broadcast %214 : vector<2x1xi32> to vector<2x256xi32>
      %216 = arith.cmpi sge, %162, %215 : vector<2x256xi32>
      %217 = arith.extui %216 : vector<2x256xi1> to vector<2x256xi32>
      %cst_96 = arith.constant dense<0> : vector<2xi32>
      %218 = vector.multi_reduction <add>, %217, %cst_96 [1] : vector<2x256xi32> to vector<2xi32>
      %219 = vector.shape_cast %218 : vector<2xi32> to vector<2x1xi32>
      %220 = arith.cmpi sge, %219, %161 : vector<2x1xi32>
      %221 = arith.select %220, %214, %arg11 : vector<2x1xi1>, vector<2x1xi32>
      %222 = arith.select %220, %arg12, %214 : vector<2x1xi1>, vector<2x1xi32>
      scf.yield %221, %222 : vector<2x1xi32>, vector<2x1xi32>
    }
    %170 = vector.broadcast %169#0 : vector<2x1xi32> to vector<2x256xi32>
    %171 = arith.cmpi sgt, %162, %170 : vector<2x256xi32>
    %172 = vector.broadcast %169#0 : vector<2x1xi32> to vector<2x256xi32>
    %173 = arith.cmpi eq, %162, %172 : vector<2x256xi32>
    %174 = arith.extui %171 : vector<2x256xi1> to vector<2x256xi32>
    %cst_82 = arith.constant dense<0> : vector<2xi32>
    %175 = vector.multi_reduction <add>, %174, %cst_82 [1] : vector<2x256xi32> to vector<2xi32>
    %176 = vector.shape_cast %175 : vector<2xi32> to vector<2x1xi32>
    %177 = arith.subi %161, %176 : vector<2x1xi32>
    %c0_i32_83 = arith.constant 0 : i32
    %178 = vector.broadcast %c0_i32_83 : i32 to vector<2x1xi32>
    %c256_i32_84 = arith.constant 256 : i32
    %179 = vector.broadcast %c256_i32_84 : i32 to vector<2x1xi32>
    %c0_i32_85 = arith.constant 0 : i32
    %c9_i32 = arith.constant 9 : i32
    %180 = arith.addi %c0_i32_85, %c9_i32 : i32
    %c1_i32_86 = arith.constant 1 : i32
    %181:2 = scf.for %arg10 = %c0_i32_85 to %180 step %c1_i32_86 iter_args(%arg11 = %178, %arg12 = %179) -> (vector<2x1xi32>, vector<2x1xi32>)  : i32 {
      %211 = arith.subi %arg12, %arg11 : vector<2x1xi32>
      %c1_i32_95 = arith.constant 1 : i32
      %212 = vector.broadcast %c1_i32_95 : i32 to vector<2x1xi32>
      %213 = arith.shrsi %211, %212 : vector<2x1xi32>
      %214 = arith.addi %arg11, %213 : vector<2x1xi32>
      %215 = vector.broadcast %214 : vector<2x1xi32> to vector<2x256xi32>
      %216 = arith.cmpi slt, %143, %215 : vector<2x256xi32>
      %217 = arith.andi %173, %216 : vector<2x256xi1>
      %218 = arith.extui %217 : vector<2x256xi1> to vector<2x256xi32>
      %cst_96 = arith.constant dense<0> : vector<2xi32>
      %219 = vector.multi_reduction <add>, %218, %cst_96 [1] : vector<2x256xi32> to vector<2xi32>
      %220 = vector.shape_cast %219 : vector<2xi32> to vector<2x1xi32>
      %221 = arith.cmpi sge, %220, %177 : vector<2x1xi32>
      %222 = arith.select %221, %arg11, %214 : vector<2x1xi1>, vector<2x1xi32>
      %223 = arith.select %221, %214, %arg12 : vector<2x1xi1>, vector<2x1xi32>
      scf.yield %222, %223 : vector<2x1xi32>, vector<2x1xi32>
    }
    %c0_i32_87 = arith.constant 0 : i32
    %182 = vector.broadcast %c0_i32_87 : i32 to vector<2x1xi32>
    %183 = arith.cmpi sgt, %177, %182 : vector<2x1xi32>
    %c0_i32_88 = arith.constant 0 : i32
    %184 = vector.broadcast %c0_i32_88 : i32 to vector<2x1xi32>
    %185 = arith.select %183, %181#1, %184 : vector<2x1xi1>, vector<2x1xi32>
    %186 = vector.broadcast %185 : vector<2x1xi32> to vector<2x256xi32>
    %187 = arith.cmpi slt, %143, %186 : vector<2x256xi32>
    %188 = arith.andi %173, %187 : vector<2x256xi1>
    %189 = arith.ori %171, %188 : vector<2x256xi1>
    %190 = arith.extui %189 : vector<2x256xi1> to vector<2x256xi32>
    %191 = arith.sitofp %190 : vector<2x256xi32> to vector<2x256xf32>
    %192 = arith.addf %147, %191 : vector<2x256xf32>
    %193 = arith.mulf %142, %192 : vector<2x256xf32>
    %cst_89 = arith.constant dense<0.000000e+00> : vector<2xf32>
    %194 = vector.multi_reduction <add>, %193, %cst_89 [1] : vector<2x256xf32> to vector<2xf32>
    %195 = vector.shape_cast %194 : vector<2xf32> to vector<2x1xf32>
    %196 = arith.addf %153, %195 : vector<2x1xf32>
    %197 = arith.sitofp %150 : vector<2x1xi32> to vector<2x1xf32>
    %c0_i32_90 = arith.constant 0 : i32
    %198 = vector.broadcast %c0_i32_90 : i32 to vector<2x1xi32>
    %199 = arith.cmpi sgt, %150, %198 : vector<2x1xi32>
    %200 = arith.extui %199 : vector<2x1xi1> to vector<2x1xi32>
    %201 = arith.sitofp %200 : vector<2x1xi32> to vector<2x1xf32>
    %202 = arith.mulf %196, %201 : vector<2x1xf32>
    %cst_91 = arith.constant 9.99999997E-7 : f32
    %203 = vector.broadcast %cst_91 : f32 to vector<2x1xf32>
    %204 = arith.maximumf %197, %203 : vector<2x1xf32>
    %205 = arith.divf %202, %204 : vector<2x1xf32>
    %206 = vector.shape_cast %205 : vector<2x1xf32> to vector<2x1xf32>
    %207 = vector.broadcast %206 : vector<2x1xf32> to vector<2x128xf32>
    %c0_92 = arith.constant 0 : index
    %c0_93 = arith.constant 0 : index
    %c0_94 = arith.constant 0 : index
    %208 = vector.load %arg6[%c0_92, %c0_93, %c0_94] : memref<1x2x128xf32, #tpu.memory_space<vmem>>, vector<1x2x128xf32>
    %209 = vector.shape_cast %208 : vector<1x2x128xf32> to vector<2x128xf32>
    %210 = vector.shape_cast %207 : vector<2x128xf32> to vector<1x2x128xf32>
    tpu.vector_store %arg6[%c0_92, %c0_93, %c0_94], %210 {strides = array<i32>} : memref<1x2x128xf32, #tpu.memory_space<vmem>>, vector<1x2x128xf32>,
    return
  }
  func.func @transform_0(%arg0: i32) -> (i32, i32, i32) {
    %c0_i32 = arith.constant 0 : i32
    %c0_i32_0 = arith.constant 0 : i32
    %c0_i32_1 = arith.constant 0 : i32
    return %arg0, %c0_i32, %c0_i32_0 : i32, i32, i32
  }
  func.func @transform_1(%arg0: i32) -> (i32, i32, i32) {
    %c0_i32 = arith.constant 0 : i32
    %c0_i32_0 = arith.constant 0 : i32
    %c0_i32_1 = arith.constant 0 : i32
    return %arg0, %c0_i32, %c0_i32_0 : i32, i32, i32
  }
  func.func @transform_2(%arg0: i32) -> (i32, i32, i32) {
    %c0_i32 = arith.constant 0 : i32
    %c0_i32_0 = arith.constant 0 : i32
    %c0_i32_1 = arith.constant 0 : i32
    return %arg0, %c0_i32, %c0_i32_0 : i32, i32, i32
  }
  func.func @transform_3(%arg0: i32) -> (i32, i32, i32) {
    %c0_i32 = arith.constant 0 : i32
    %c0_i32_0 = arith.constant 0 : i32
    %c0_i32_1 = arith.constant 0 : i32
    return %arg0, %c0_i32, %c0_i32_0 : i32, i32, i32
  }
  func.func @transform_4(%arg0: i32) -> (i32, i32, i32) {
    %c0_i32 = arith.constant 0 : i32
    %c0_i32_0 = arith.constant 0 : i32
    %c0_i32_1 = arith.constant 0 : i32
    %c0_i32_2 = arith.constant 0 : i32
    return %c0_i32, %c0_i32_0, %c0_i32_1 : i32, i32, i32
  }
  func.func @transform_5(%arg0: i32) -> (i32, i32, i32) {
    %c0_i32 = arith.constant 0 : i32
    %c0_i32_0 = arith.constant 0 : i32
    %c0_i32_1 = arith.constant 0 : i32
    return %arg0, %c0_i32, %c0_i32_0 : i32, i32, i32
  }
}

</mosaic_0001>

<bundles_post_ra>
// kernel: tpu_custom_call.1
= control target key start
LH: loop header
LB: loop body
LE: loop exit
PB: predicated region body
PF: predicated region fallthrough
CT: control target
= control target key end

     0   :  { %10 = vsyncpa [#allocation6], 0  ;;  %s1232_s0 = inlined_call_operand.hbm [shape: f32[2,4,256], index: 0, kind: input, shape index: {}]   ;;  %s1233_s1 = inlined_call_operand.hbm [shape: f32[2,4,256], index: 1, kind: input, shape index: {}]   ;;  %s1234_s2 = inlined_call_operand.hbm [shape: f32[2,8,256], index: 2, kind: input, shape index: {}]   ;;  %s1235_s3 = inlined_call_operand.vmem [shape: s32[2,1,256], index: 3, kind: input, shape index: {}]   ;;  %s1236_s4 = inlined_call_operand.hbm [shape: f32[1,4,256], index: 4, kind: input, shape index: {}]   ;;  %s1237_s5 = inlined_call_operand.hbm [shape: f32[1,2,128], index: 5, kind: output, shape index: {}]  }
   0x1   :  { %11 = vsyncpa [#allocation9], 0 }
   0x2   :  { %12 = vsyncpa [#allocation12], 0 }
   0x3   :  { %13 = vsyncpa [#allocation7], 0  ;;  %s941_s18 = smov [#allocation8]   ;;  %s942_s20 = smov [#allocation5]  }
   0x4   :  { %s31_s19 = sshll.u32 %s941_s18, 4  ;;  %s19_s21 = sshll.u32 %s942_s20, 4  ;;  %s32_s19 = int_to_ptr.vmem [resolvable:$true] %s31_s19  ;;  %s20_s21 = int_to_ptr.vmem [resolvable:$true] %s19_s21 }
   0x5   :  { %s793_s22 = scalar_lea.vmem %s32_s19, 256  ;;  %p798_p1 = scmp.lt.s32.totalorder %s32_s19, %s32_s19 }
   0x6   :  { %p794_p0 = scmp.ne.s32.totalorder %s32_s19, %s793_s22  ;;  %p799_p2 = scmp.lt.s32.totalorder %s793_s22, %s793_s22 }
   0x8   :  { %p800_p3 = por %p799_p2, %p798_p1 }
   0xa   :  { %p801_p4 = pnand %p800_p3, %p794_p0 }
   0xc   :  { %804 = shalt.err (!%p801_p4)
}
   0xd   :  { %s943_s23 = smov 128   ;;  %s944_s24 = smov 8  }
   0xe   :  { %37 = dma.hbm_to_vmem [thread:$0]  %s1233_s1, 256, %s32_s19, [#allocation9], %s943_s23, %s943_s23, %s944_s24  }
   0xf   :  { %s813_s27 = scalar_lea.vmem %s20_s21, 256  ;;  %p818_p6 = scmp.lt.s32.totalorder %s20_s21, %s20_s21 }
  0x10   :  { %p814_p5 = scmp.ne.s32.totalorder %s20_s21, %s813_s27  ;;  %p819_p7 = scmp.lt.s32.totalorder %s813_s27, %s813_s27 }
  0x12   :  { %p820_p8 = por %p819_p7, %p818_p6 }
  0x14   :  { %p821_p9 = pnand %p820_p8, %p814_p5 }
  0x16   :  { %824 = shalt.err (!%p821_p9)
}
  0x17   :  { %25 = dma.hbm_to_vmem [thread:$0]  %s1232_s0, 256, %s20_s21, [#allocation6], %s943_s23, %s943_s23, %s944_s24  }
  0x18   :  { %s945_s30 = smov [#allocation10]  }
  0x19   :  { %s43_s6 = sshll.u32 %s945_s30, 4  ;;  %s44_s6 = int_to_ptr.vmem [resolvable:$true] %s43_s6 }
  0x1a   :  { %s833_s7 = scalar_lea.vmem %s44_s6, 512  ;;  %p838_p11 = scmp.lt.s32.totalorder %s44_s6, %s44_s6 }
  0x1b   :  { %p834_p10 = scmp.ne.s32.totalorder %s44_s6, %s833_s7  ;;  %p839_p12 = scmp.lt.s32.totalorder %s833_s7, %s833_s7 }
  0x1d   :  { %p840_p13 = por %p839_p12, %p838_p11 }
  0x1f   :  { %p841_p0 = pnand %p840_p13, %p834_p10 }
  0x21   :  { %844 = shalt.err (!%p841_p0)
}
  0x22   :  { %s946_s1 = smov 256   ;;  %s947_s8 = smov 16  }
  0x23   :  { %49 = dma.hbm_to_vmem [thread:$0]  %s1234_s2, 512, %s44_s6, [#allocation9], %s946_s1, %s946_s1, %s947_s8  }
  0x24   :  { %s948_s11 = smov [#allocation11]  }
  0x25   :  { %s58_s12 = sshll.u32 %s948_s11, 4  ;;  %s59_s12 = int_to_ptr.vmem [resolvable:$true] %s58_s12 }
  0x26   :  { %s853_s0 = scalar_lea.vmem %s59_s12, 128  ;;  %p858_p2 = scmp.lt.s32.totalorder %s59_s12, %s59_s12 }
  0x27   :  { %p854_p1 = scmp.ne.s32.totalorder %s59_s12, %s853_s0  ;;  %p859_p3 = scmp.lt.s32.totalorder %s853_s0, %s853_s0 }
  0x29   :  { %p860_p4 = por %p859_p3, %p858_p2 }
  0x2b   :  { %p861_p5 = pnand %p860_p4, %p854_p1 }
  0x2d   :  { %864 = shalt.err (!%p861_p5)
}
  0x2e   :  { %61 = dma.hbm_to_vmem [thread:$0]  %s1236_s4, 128, %s59_s12, [#allocation12]  }
  0x2f   :  { %909 = dma.done.wait [#allocation6], 256  }
  0x30   :  { %910 = vsyncadd [#allocation6], 4294967040 }
  0x31   :  { %911 = dma.done.wait [#allocation9], 768  }
  0x32   :  { %912 = vsyncadd [#allocation9], 4294966528 }
  0x33   :  { %913 = dma.done.wait [#allocation12], 128  }
  0x34   :  { %914 = vsyncadd [#allocation12], 4294967168  ;;  %v75_v0 = vlaneseq  ;;  %v1007_v4 = vld [vmem:[#allocation10] sm:$0xff]  ;;  %v1009_v5 = vld [vmem:[#allocation10 + $0x8] sm:$0xff]  ;;  %v949_v30 = vmov 1983009808  }
  0x35   :  { %v1014_v6 = vld [vmem:[%s1235_s3] sm:$0x3]  ;;  %v172_v7 = vrot.slane %v1007_v4, 4  ;;  %v178_v8 = vrot.slane %v1009_v5, 4  ;;  %v1023_v10 = vld [vmem:[#allocation10 + $0x18] sm:$0xff]  ;;  %v438_v31 = vunpack.c.l.s4 %v949_v30  ;;  %v950_v47 = vmov 0.0  }
  0x36   :  { %v998_v1 = vand.u32 127, %v75_v0  ;;  %vm1003_vm0 = vcmp.lt.s32.totalorder %v75_v0, 256  ;;  %v1021_v9 = vld [vmem:[#allocation10 + $0x10] sm:$0xff]  ;;  %v351_v13 = vrot.slane %v1023_v10, 4  ;;  %v1057_v44 = vshrl.u32 %v75_v0, 7 }
  0x37   :  { %253 = vst.msk [vmem:[#allocation4] ss:$2 sm:$0x3] %vm1003_vm0, %v1014_v6  ;;  %v1028_v11 = vld [vmem:[%s1235_s3 + $0x2] sm:$0x3]  ;;  %v345_v12 = vrot.slane %v1021_v9, 4  ;;  %v173_v14 = vmax.f32 %v1007_v4, %v172_v7  ;;  %v179_v15 = vmax.f32 %v1009_v5, %v178_v8  ;;  %v439_v41 = vunpack.c.0.s8 %v438_v31 }
  0x38   :  { %v1001_v2 = vadd.s32 128, %v998_v1  ;;  %428 = vst.msk [vmem:[#allocation4 + $0x1] ss:$2 sm:$0x3] %vm1003_vm0, %v1028_v11  ;;  %v352_v17 = vmax.f32 %v1023_v10, %v351_v13  ;;  %v951_v50 = vmov 0   ;;  %vm104_vm2 = vcmask 1041408  }
  0x39   :  { %v346_v16 = vmax.f32 %v1021_v9, %v345_v12  ;;  %v174_v18 = vrot.slane %v173_v14, 2  ;;  %v180_v19 = vrot.slane %v179_v15, 2  ;;  %v1066_v49 = vsub.s32 %v439_v41, %v1057_v44  ;;  %s1150_s3 = smov 0  }
  0x3a   :  { %v353_v21 = vrot.slane %v352_v17, 2  ;;  %v210_v55 = vsub.s32 0, %v1057_v44  ;;  %v214_v56 = vsub.s32 1, %v1057_v44  ;;  %vm82_vm12 = vcmp.gt.s32.totalorder %v1014_v6, 0 }
  0x3b   :  { %v347_v20 = vrot.slane %v346_v16, 2  ;;  %v175_v22 = vmax.f32 %v173_v14, %v174_v18  ;;  %v181_v23 = vmax.f32 %v179_v15, %v180_v19  ;;  %vm263_vm13 = vcmp.gt.s32.totalorder %v1028_v11, 0 }
  0x3c   :  { %v354_v25 = vmax.f32 %v352_v17, %v353_v21  ;;  %v211_v59 = vrot.slane %v1014_v6, %v210_v55  ;;  %v215_v61 = vrot.slane %v1014_v6, %v214_v56  ;;  %v384_v62 = vrot.slane %v1028_v11, %v210_v55 }
  0x3d   :  { %v348_v24 = vmax.f32 %v346_v16, %v347_v20  ;;  %v176_v26 = vrot.slane %v175_v22, 1  ;;  %v182_v27 = vrot.slane %v181_v23, 1  ;;  %v388_v7 = vrot.slane %v1028_v11, %v214_v56  ;;  %v74_v56 = vld [vmem:[#allocation11] sm:$0xff] }
  0x3e   :  { %v355_v29 = vrot.slane %v354_v25, 1  ;;  %vm216_vm3 = vcmp.eq.s32.totalorder %v1057_v44, %v211_v59  ;;  %vm217_vm4 = vcmp.eq.s32.totalorder %v1057_v44, %v215_v61  ;;  %vm389_vm5 = vcmp.eq.s32.totalorder %v1057_v44, %v384_v62  ;;  %v257_v59 = vld [vmem:[#allocation8 + $0x8] sm:$0xff] }
  0x3f   :  { %v349_v28 = vrot.slane %v348_v24, 1  ;;  %v1039_v32 = vmax.f32 %v175_v22, %v176_v26  ;;  %v1041_v33 = vmax.f32 %v181_v23, %v182_v27  ;;  %v1055_v40 = vld [vmem:[#allocation4] sm:$0xf]  ;;  %v218_v19 = vsel %vm216_vm3, %v1007_v4, 0.0 }
  0x40   :  { %v1045_v35 = vmax.f32 %v354_v25, %v355_v29  ;;  %vm434_vm1 = vcmp.gt.s32.totalorder %v1055_v40, 0  ;;  %vm390_vm6 = vcmp.eq.s32.totalorder %v1057_v44, %v388_v7  ;;  %v219_v22 = vsel %vm217_vm4, %v1009_v5, 0.0 }
  0x41   :  { %v1043_v34 = vmax.f32 %v348_v24, %v349_v28  ;;  %v184_v36 = vsub.f32 %v1007_v4, %v1039_v32  ;;  %v185_v37 = vsub.f32 %v1009_v5, %v1041_v33  ;;  %v1063_v48 = vsel %vm434_vm1, 1.0, %v950_v47 }
  0x42   :  { %v358_v39 = vsub.f32 %v1023_v10, %v1045_v35  ;;  %v435_v51 = vsel %vm434_vm1, 1, %v951_v50  ;;  %v391_v26 = vsel %vm389_vm5, %v1021_v9, 0.0  ;;  %v220_v28 = vrot.slane %v218_v19, 4 }
  0x43   :  { %v357_v38 = vsub.f32 %v1021_v9, %v1043_v34  ;;  %v186_v42 = vmul.f32 1.442695, %v184_v36  ;;  %v188_v43 = vmul.f32 1.442695, %v185_v37  ;;  %v443_v52 = vrot.slane %v435_v51, %v1066_v49 }
  0x44   :  { %v361_v46 = vmul.f32 1.442695, %v358_v39  ;;  %v392_v30 = vsel %vm390_vm6, %v1023_v10, 0.0  ;;  %v226_v36 = vrot.slane %v219_v22, 4  ;;  %v393_v39 = vrot.slane %v391_v26, 4 }
  0x45   :  { %v359_v45 = vmul.f32 1.442695, %v357_v38  ;;  %763 = vpow2.f32 %v186_v42  ;;  %v444_v53 = vcombine.high %v443_v52, %v443_v52  ;;  %v445_v54 = vsel %vm104_vm2, %v443_v52, 0 }
  0x46   :  { %765 = vpow2.f32 %v188_v43  ;;  %v399_v43 = vrot.slane %v392_v30, 4  ;;  %v227_v52 = vadd.f32 %v226_v36, %v219_v22  ;;  %v267_v62 = vmul.f32 %v257_v59, %v74_v56 }
  0x47   :  { %767 = vpow2.f32 %v359_v45  ;;  %v446_v57 = vsel %vm104_vm2, %v444_v53, 0  ;;  %v221_v45 = vadd.f32 %v220_v28, %v218_v19 }
  0x48   :  { %769 = vpow2.f32 %v361_v46  ;;  %v1076_v58 = vadd.s32 %v446_v57, %v445_v54  ;;  %v394_v54 = vadd.f32 %v393_v39, %v391_v26  ;;  %v400_v55 = vadd.f32 %v399_v43, %v392_v30  ;;  %v78_v57 = vld [vmem:[#allocation8] sm:$0xff] }
  0x49   :  { %v90_v61 = vmul.f32 %v78_v57, %v74_v56 }
  0x4a   :  { %v448_v60 = vand.u32 65535, %v1076_v58  ;;  %v401_v7 = vrot.slane %v400_v55, 2 }
  0x4c   :  { %v450_v63 = vcvt.s32.f32 %v448_v60  ;;  %v222_v60 = vrot.slane %v221_v45, 2 }
  0x4e   :  { %452 = vadd.xlane.f32.xlu1 %v450_v63  ;;  %v228_v63 = vrot.slane %v227_v52, 2 }
  0x52   :  { %v764_v0 = vpop.eup %763 }
  0x53   :  { %v766_v8 = vpop.eup %765  ;;  %v190_v12 = vrot.slane %v764_v0, 4 }
  0x54   :  { %v768_v13 = vpop.eup %767  ;;  %v196_v14 = vrot.slane %v766_v8, 4 }
  0x55   :  { %v770_v15 = vpop.eup %769  ;;  %v191_v16 = vadd.f32 %v764_v0, %v190_v12  ;;  %v363_v17 = vrot.slane %v768_v13, 4  ;;  %v395_v0 = vrot.slane %v394_v54, 2  ;;  %v229_v12 = vadd.f32 %v228_v63, %v227_v52 }
  0x56   :  { %v197_v18 = vadd.f32 %v766_v8, %v196_v14  ;;  %v369_v20 = vrot.slane %v770_v15, 4  ;;  %v223_v8 = vadd.f32 %v222_v60, %v221_v45  ;;  %v952_v14 = vmov 1966171168  }
  0x57   :  { %v192_v21 = vrot.slane %v191_v16, 2  ;;  %v364_v23 = vadd.f32 %v768_v13, %v363_v17  ;;  %v396_v13 = vadd.f32 %v395_v0, %v394_v54  ;;  %v83_v45 = vsub.f32 %v78_v57, %v74_v56 }
  0x58   :  { %v198_v24 = vrot.slane %v197_v18, 2  ;;  %v370_v25 = vadd.f32 %v770_v15, %v369_v20  ;;  %v152_v15 = vunpack.c.l.s4 %v952_v14  ;;  %v224_v17 = vrot.slane %v223_v8, 1 }
  0x59   :  { %v193_v27 = vadd.f32 %v192_v21, %v191_v16  ;;  %v365_v29 = vrot.slane %v364_v23, 2  ;;  %v402_v16 = vadd.f32 %v401_v7, %v400_v55  ;;  %v397_v19 = vrot.slane %v396_v13, 1 }
  0x5a   :  { %v199_v31 = vadd.f32 %v198_v24, %v197_v18  ;;  %v371_v37 = vrot.slane %v370_v25, 2  ;;  %v230_v18 = vrot.slane %v229_v12, 1  ;;  %v153_v21 = vunpack.c.0.s8 %v152_v15 }
  0x5b   :  { %v194_v4 = vrot.slane %v193_v27, 1  ;;  %v366_v38 = vadd.f32 %v365_v29, %v364_v23  ;;  %v403_v22 = vrot.slane %v402_v16, 1  ;;  %v398_v36 = vadd.f32 %v397_v19, %v396_v13 }
  0x5c   :  { %v200_v41 = vrot.slane %v199_v31, 1  ;;  %v372_v42 = vadd.f32 %v371_v37, %v370_v25  ;;  %v225_v25 = vadd.f32 %v224_v17, %v223_v8  ;;  %v231_v28 = vadd.f32 %v230_v18, %v229_v12 }
  0x5d   :  { %v195_v5 = vadd.f32 %v194_v4, %v193_v27  ;;  %v367_v46 = vrot.slane %v366_v38, 1  ;;  %v1093_v4 = vsub.s32 %v153_v21, %v1057_v44  ;;  %v84_v54 = vmul.f32 10.0, %v83_v45 }
  0x5e   :  { %v201_v51 = vadd.f32 %v200_v41, %v199_v31  ;;  %v373_v9 = vrot.slane %v372_v42, 1  ;;  %v404_v41 = vadd.f32 %v403_v22, %v402_v16 }
  0x5f   :  { %771 = vlog2.f32 %v195_v5  ;;  %v368_v53 = vadd.f32 %v367_v46, %v366_v38  ;;  %v86_v46 = vrot.slane %v74_v56, 6 }
  0x60   :  { %773 = vlog2.f32 %v201_v51  ;;  %v374_v10 = vadd.f32 %v373_v9, %v372_v42  ;;  %v264_v9 = vsub.f32 %v257_v59, %v74_v56 }
  0x61   :  { %775 = vlog2.f32 %v368_v53 }
  0x62   :  { %777 = vlog2.f32 %v374_v10  ;;  %v87_v10 = vrot.slane %v86_v46, 4  ;;  %v265_v63 = vmul.f32 10.0, %v264_v9 }
  0x63   :  { %779 = vlog2.f32 %v90_v61 }
  0x64   :  { %781 = vlog2.f32 %v267_v62  ;;  %v255_v62 = vld [vmem:[#allocation5 + $0x8] sm:$0xff]  ;;  %v89_v0 = vmul.f32 %v87_v10, %v84_v54  ;;  %v266_v12 = vmul.f32 %v265_v63, %v87_v10 }
  0x66   :  { %v271_v18 = vsub.f32 %v255_v62, %v266_v12 }
  0x6c   :  { %v772_v20 = vpop.eup %771 }
  0x6d   :  { %v774_v23 = vpop.eup %773  ;;  %v203_v24 = vmul.f32 0.6931472, %v772_v20 }
  0x6e   :  { %v776_v26 = vpop.eup %775  ;;  %v205_v27 = vmul.f32 0.6931472, %v774_v23 }
  0x6f   :  { %v778_v29 = vpop.eup %777  ;;  %v206_v30 = vadd.f32 %v203_v24, %v1039_v32  ;;  %v376_v31 = vmul.f32 0.6931472, %v776_v26  ;;  %v274_v26 = vmul.f32 0.5, %v271_v18 }
  0x70   :  { %v780_v37 = vpop.eup %779  ;;  %v207_v38 = vadd.f32 %v205_v27, %v1041_v33  ;;  %v378_v39 = vmul.f32 0.6931472, %v778_v29  ;;  %v77_v33 = vld [vmem:[#allocation5] sm:$0xff] }
  0x71   :  { %v782_v42 = vpop.eup %781  ;;  %v232_v43 = vsub.f32 %v206_v30, %v225_v25  ;;  %v379_v5 = vadd.f32 %v376_v31, %v1043_v34  ;;  %v92_v32 = vmul.f32 0.6931472, %v780_v37  ;;  %v272_v25 = vand.u32 2147483647, %v271_v18 }
  0x72   :  { %v233_v51 = vsub.f32 %v207_v38, %v231_v28  ;;  %v380_v52 = vadd.f32 %v378_v39, %v1045_v35  ;;  %v269_v44 = vmul.f32 0.6931472, %v782_v42  ;;  %v94_v35 = vsub.f32 %v77_v33, %v89_v0 }
  0x73   :  { %v405_v53 = vsub.f32 %v379_v5, %v398_v36  ;;  %v93_v61 = vmul.f32 5.0, %v92_v32  ;;  %vm273_vm9 = vcmp.lt.f32.partialorder %v272_v25, 1.0  ;;  %v275_v31 = vmul.f32 %v274_v26, %v271_v18 }
  0x74   :  { %v236_v55 = vcombine.low %v232_v43, %v233_v51  ;;  %v406_v60 = vsub.f32 %v380_v52, %v404_v41  ;;  %v270_v7 = vmul.f32 5.0, %v269_v44  ;;  %v95_v16 = vand.u32 2147483647, %v94_v35 }
  0x75   :  { %v119_v8 = vsub.f32 %v77_v33, %v93_v61  ;;  %v97_v17 = vmul.f32 0.5, %v94_v35  ;;  %v693_v38 = vadd.f32 -0.5, %v272_v25 }
  0x76   :  { %v243_v34 = vrot.slane %v236_v55, %v1093_v4  ;;  %v409_v57 = vcombine.low %v405_v53, %v406_v60  ;;  %v295_v13 = vsub.f32 %v255_v62, %v270_v7  ;;  %v690_v24 = vadd.f32 -0.5, %v95_v16 }
  0x77   :  { %v120_v14 = vand.u32 2147483647, %v119_v8  ;;  %v122_v15 = vmul.f32 0.5, %v119_v8  ;;  %v98_v23 = vmul.f32 %v97_v17, %v94_v35  ;;  %vm96_vm8 = vcmp.lt.f32.partialorder %v95_v16, 1.0 }
  0x78   :  { %v250_v56 = vrot.slane %v243_v34, %v1093_v4  ;;  %v416_v59 = vrot.slane %v409_v57, %v1093_v4  ;;  %v296_v19 = vand.u32 2147483647, %v295_v13  ;;  %v298_v28 = vmul.f32 0.5, %v295_v13 }
  0x79   :  { %vm121_vm7 = vcmp.lt.f32.partialorder %v120_v14, 1.0  ;;  %v123_v21 = vmul.f32 %v122_v15, %v119_v8  ;;  %v691_v22 = vadd.f32 -0.5, %v120_v14  ;;  %v100_v29 = vsel %vm96_vm8, %v98_v23, %v690_v24 }
  0x7a   :  { %252 = vst.msk [vmem:[#allocation2] ss:$2 sm:$0x3] %vm1003_vm0, %v250_v56  ;;  %v423_v20 = vrot.slane %v416_v59, %v1093_v4  ;;  %v102_v36 = vcombine.high %v100_v29, %v100_v29  ;;  %v299_v39 = vmul.f32 %v298_v28, %v295_v13  ;;  %vm297_vm10 = vcmp.lt.f32.partialorder %v296_v19, 1.0 }
  0x7b   :  { %v125_v27 = vsel %vm121_vm7, %v123_v21, %v691_v22  ;;  %v694_v42 = vadd.f32 -0.5, %v296_v19  ;;  %v105_v43 = vsel %vm104_vm2, %v100_v29, 0.0  ;;  %v277_v46 = vsel %vm273_vm9, %v275_v31, %v693_v38 }
  0x7c   :  { %426 = vst.msk [vmem:[#allocation2 + $0x1] ss:$2 sm:$0x3] %vm1003_vm0, %v423_v20  ;;  %v127_v30 = vcombine.high %v125_v27, %v125_v27  ;;  %v128_v37 = vrot.slane %v125_v27, 2  ;;  %v112_v5 = vsel %vm104_vm2, %v102_v36, 0.0  ;;  %v106_v51 = vrot.slane %v105_v43, 4 }
  0x7d   :  { %v113_v52 = vrot.slane %v112_v5, 4  ;;  %v279_v54 = vcombine.high %v277_v46, %v277_v46  ;;  %v281_v10 = vsel %vm104_vm2, %v277_v46, 0.0  ;;  %v301_v44 = vsel %vm297_vm10, %v299_v39, %v694_v42 }
  0x7e   :  { %v129_v41 = vrot.slane %v127_v30, 2  ;;  %v132_v45 = vsel %vm104_vm2, %v128_v37, 0.0  ;;  %v107_v60 = vadd.f32 %v106_v51, %v105_v43  ;;  %v282_v62 = vrot.slane %v281_v10, 4 }
  0x7f   :  { %v133_v32 = vrot.slane %v132_v45, 4  ;;  %v114_v33 = vadd.f32 %v113_v52, %v112_v5  ;;  %v288_v7 = vsel %vm104_vm2, %v279_v54, 0.0  ;;  %v303_v34 = vcombine.high %v301_v44, %v301_v44 }
  0x80   :  { %v139_v9 = vsel %vm104_vm2, %v129_v41, 0.0  ;;  %v108_v8 = vrot.slane %v107_v60, 2  ;;  %v283_v56 = vadd.f32 %v282_v62, %v281_v10  ;;  %v289_v59 = vrot.slane %v288_v7, 4 }
  0x81   :  { %v140_v53 = vrot.slane %v139_v9, 4  ;;  %v134_v61 = vadd.f32 %v133_v32, %v132_v45  ;;  %v115_v12 = vrot.slane %v114_v33, 2  ;;  %v304_v14 = vrot.slane %v301_v44, 2 }
  0x82   :  { %v109_v16 = vadd.f32 %v108_v8, %v107_v60  ;;  %v284_v19 = vrot.slane %v283_v56, 2  ;;  %v290_v20 = vadd.f32 %v289_v59, %v288_v7  ;;  %v305_v21 = vrot.slane %v303_v34, 2 }
  0x83   :  { %v1111_v55 = vld [vmem:[#allocation2] sm:$0xf]  ;;  %v141_v0 = vadd.f32 %v140_v53, %v139_v9  ;;  %v135_v35 = vrot.slane %v134_v61, 2  ;;  %v116_v17 = vadd.f32 %v115_v12, %v114_v33  ;;  %v308_v36 = vsel %vm104_vm2, %v304_v14, 0.0 }
  0x84   :  { %v477_v63 = vsel %vm434_vm1, 0.0, %v1111_v55  ;;  %v110_v24 = vrot.slane %v109_v16, 1  ;;  %v291_v28 = vrot.slane %v290_v20, 2  ;;  %v285_v41 = vadd.f32 %v284_v19, %v283_v56 }
  0x85   :  { %v478_v57 = vmax.f32 %v477_v63, 0.0  ;;  %v142_v13 = vrot.slane %v141_v0, 2  ;;  %v136_v18 = vadd.f32 %v135_v35, %v134_v61  ;;  %v117_v25 = vrot.slane %v116_v17, 1 }
  0x86   :  { %v111_v30 = vadd.f32 %v110_v24, %v109_v16  ;;  %v309_v42 = vrot.slane %v308_v36, 4  ;;  %v315_v43 = vsel %vm104_vm2, %v305_v21, 0.0  ;;  %v449_v45 = vshrl.u32 %v1076_v58, 16 }
  0x87   :  { %v1118_v15 = vrot.slane %v478_v57, %v1066_v49  ;;  %v143_v40 = vadd.f32 %v142_v13, %v141_v0  ;;  %v137_v26 = vrot.slane %v136_v18, 1  ;;  %v118_v31 = vadd.f32 %v117_v25, %v116_v17 }
  0x88   :  { %v292_v52 = vadd.f32 %v291_v28, %v290_v20  ;;  %v310_v32 = vadd.f32 %v309_v42, %v308_v36  ;;  %v316_v9 = vrot.slane %v315_v43, 4  ;;  %v286_v10 = vrot.slane %v285_v41, 1 }
  0x89   :  { %v1122_v22 = vcombine.high %v1118_v15, %v1118_v15  ;;  %v491_v23 = vsel %vm104_vm2, %v1118_v15, 2147483648  ;;  %v144_v27 = vrot.slane %v143_v40, 1  ;;  %v138_v37 = vadd.f32 %v137_v26, %v136_v18 }
  0x8a   :  { %v311_v44 = vrot.slane %v310_v32, 2  ;;  %v317_v60 = vadd.f32 %v316_v9, %v315_v43  ;;  %v451_v33 = vcvt.s32.f32 %v449_v45  ;;  %v293_v62 = vrot.slane %v292_v52, 1 }
  0x8b   :  { %v492_v29 = vsel %vm104_vm2, %v1122_v22, 2147483648  ;;  %v145_v38 = vadd.f32 %v144_v27, %v143_v40  ;;  %v146_v46 = vadd.f32 %v138_v37, %v111_v30  ;;  %v287_v7 = vadd.f32 %v286_v10, %v285_v41 }
  0x8c   :  { %vm493_vm11 = vcmp.gt.s32.totalorder %v491_v23, %v492_v29  ;;  %v312_v63 = vadd.f32 %v311_v44, %v310_v32  ;;  %v318_v0 = vrot.slane %v317_v60, 2  ;;  %v294_v12 = vadd.f32 %v293_v62, %v292_v52 }
  0x8d   :  { %v494_v39 = vsel %vm493_vm11, %v491_v23, %v492_v29  ;;  %v147_v51 = vadd.f32 %v145_v38, %v118_v31 }
  0x8e   :  { %v496_v5 = vshra.s32 %v494_v39, 16  ;;  %v313_v34 = vrot.slane %v312_v63, 1  ;;  %v319_v57 = vadd.f32 %v318_v0, %v317_v60  ;;  %v495_v24 = vand.u32 65535, %v494_v39 }
  0x8f   :  { %v150_v54 = vcombine.low %v146_v46, %v147_v51  ;;  %v921_v46 = vmov 0  }
  0x90   :  { %v498_v53 = vcvt.s32.f32 %v496_v5  ;;  %v314_v35 = vadd.f32 %v313_v34, %v312_v63  ;;  %v320_v13 = vrot.slane %v319_v57, 1  ;;  %v497_v25 = vcvt.s32.f32 %v495_v24 }
  0x91   :  { %v157_v61 = vrot.slane %v150_v54, %v1093_v4 }
  0x92   :  { %499 = vmax.xlane.f32.xlu0 %v498_v53  ;;  %v321_v56 = vadd.f32 %v320_v13, %v319_v57  ;;  %v322_v59 = vadd.f32 %v314_v35, %v287_v7 }
  0x93   :  { %v164_v58 = vrot.slane %v157_v61, %v1093_v4 }
  0x94   :  { %v323_v14 = vadd.f32 %v321_v56, %v294_v12 }
  0x95   :  { %v166_v8 = vsel %vm82_vm12, %v164_v58, 0.0 }
  0x96   :  { %454 = vadd.xlane.f32.xlu0 %v451_v33  ;;  %171 = vst.msk [vmem:[#allocation3] ss:$2 sm:$0x3] %vm1003_vm0, %v166_v8  ;;  %v326_v16 = vcombine.low %v322_v59, %v323_v14 }
  0x98   :  { %v333_v17 = vrot.slane %v326_v16, %v1093_v4 }
  0x9a   :  { %v340_v6 = vrot.slane %v333_v17, %v1093_v4 }
  0x9c   :  { %v342_v18 = vsel %vm263_vm13, %v340_v6, 0.0 }
  0x9d   :  { %344 = vst.msk [vmem:[#allocation3 + $0x1] ss:$2 sm:$0x3] %vm1003_vm0, %v342_v18 }
  0xa4   :  { %v696_v40 = vld.sshfl [vmem:[#allocation3] sm:$0x33 pattern:$0x76325410] }
  0xa5   :  { %v469_v19 = vcombine.high %v696_v40, %v696_v40  ;;  %v472_v20 = vsel %vm104_vm2, %v696_v40, 0.0 }
  0xa7   :  { %v473_v21 = vsel %vm104_vm2, %v469_v19, 0.0 }
  0xa8   :  { %v474_v23 = vadd.f32 %v473_v21, %v472_v20 }
  0xaa   :  { %475 = vadd.xlane.f32.xlu0 %v474_v23 }
  0xd7   :  { %v453_v11 = vpop.xlane.xlu1 %452 }
  0xd8   :  { %v456_v29 = vcvt.f32.s32 %v453_v11 }
 0x11b   :  { %v500_v26 = vpop.xlane.xlu0 %499 }
 0x11c   :  { %vm501_vm14 = vcmp.eq.f32.partialorder %v498_v53, %v500_v26  ;;  %v506_v38 = vcvt.f32.s32 %v500_v26 }
 0x11d   :  { %v502_v27 = vsel %vm501_vm14, %v497_v25, -inf }
 0x11e   :  { %503 = vmax.xlane.f32.xlu1 %v502_v27  ;;  %v507_v41 = vshll.u32 %v506_v38, 16 }
 0x11f   :  { %v455_v4 = vpop.xlane.xlu0 %454 }
 0x120   :  { %v457_v28 = vcvt.f32.s32 %v455_v4 }
 0x122   :  { %v458_v3 = vshll.u32 %v457_v28, 16 }
 0x124   :  { %v1143_v30 = vadd.s32 %v458_v3, %v456_v29 }
 0x126   :  { %v479_v31 = vmul.u32 3, %v1143_v30 }
 0x128   :  { %vm480_vm15 = vcmp.lt.s32.totalorder %v479_v31, 256 }
 0x129   :  { %v1146_v36 = vsel %vm480_vm15, %v479_v31, 256 }
 0x133   :  { %v1148_v37 = vpop.xlane.xlu0 %475 }
 0x1a7   :  { %v504_v39 = vpop.xlane.xlu1 %503 }
 0x1a8   :  { %v505_v42 = vcvt.f32.s32 %v504_v39 }
 0x1aa   :  { %v508_v43 = vadd.s32 %v507_v41, %v505_v42 }
 0x1ac   :  { %v509_v5 = vadd.s32 1, %v508_v43  }
 0x1ae   :  { %v917_v45 = vmov %v509_v5  }
 0x1af LB: > { %v518_v51 = vsub.s32 %v919_v45, %v923_v46  ;;  %v953_v9 = vmov 0   ;;  %s515_s3 = sadd.s32 1, %s927_s3   ;;  %s927_s3 = sphi %s1150_s3, %s515_s3   ;;  %v923_v46 = vphi %v921_v46, %v922_v46   ;;  %v919_v45 = vphi %v917_v45, %v542_v45  }
 0x1b0   : > { %p512_p6 = scmp.ge.s32.totalorder %s515_s3, 31  }
 0x1b1   : > { %v519_v52 = vshra.s32 %v518_v51, 1  ;;  %v929_v25 = vmov (%p512_p6), 256   ;;  %v933_v26 = vmov (%p512_p6), 0   ;;  %s1185_s17 = smov (%p512_p6), 0  }
 0x1b3   : > { %v520_v32 = vadd.s32 %v923_v46, %v519_v52 }
 0x1b5   : > { %vm521_vm0 = vcmp.ge.s32.totalorder %v1118_v15, %v520_v32  ;;  %vm522_vm1 = vcmp.ge.s32.totalorder %v1122_v22, %v520_v32 }
 0x1b6   : > { %v523_v53 = vsel %vm521_vm0, 1, %v953_v9  ;;  %v524_v54 = vsel %vm522_vm1, 1, %v953_v9 }
 0x1b7   : > { %v525_v10 = vsel %vm104_vm2, %v523_v53, 0  ;;  %v526_v44 = vsel %vm104_vm2, %v524_v54, 0 }
 0x1b8   : > { %v527_v60 = vadd.s32 %v526_v44, %v525_v10 }
 0x1ba   : > { %v529_v33 = vshrl.u32 %v527_v60, 16  ;;  %v528_v61 = vand.u32 65535, %v527_v60 }
 0x1bc   : > { %v531_v62 = vcvt.s32.f32 %v529_v33  ;;  %v530_v63 = vcvt.s32.f32 %v528_v61 }
 0x1be   : > { %534 = vadd.xlane.f32.xlu0 %v531_v62 }
 0x1c2   : > { %532 = vadd.xlane.f32.xlu0 %v530_v63 }
 0x247   : > { %v535_v0 = vpop.xlane.xlu0 %534 }
 0x248   : > { %v537_v58 = vcvt.f32.s32 %v535_v0 }
 0x24a   : > { %v538_v34 = vshll.u32 %v537_v58, 16 }
 0x24b   : > { %v533_v7 = vpop.xlane.xlu0 %532 }
 0x24c   : > { %v536_v57 = vcvt.f32.s32 %v533_v7 }
 0x24e   : > { %v539_v8 = vadd.s32 %v538_v34, %v536_v57 }
 0x24f   :  { %514 = sbr.rel (!%p512_p6) target bundleno = 431 (0x1af), region = 77 }
 0x250   : > { %vm540_vm3 = vcmp.ge.s32.totalorder %v539_v8, %v1146_v36 }
 0x251   : > { %v1160_v46 = vsel %vm540_vm3, %v520_v32, %v923_v46   ;;  %v542_v45 = vsel %vm540_vm3, %v919_v45, %v520_v32  }
 0x252   : > { %v1240_v12 = vmov %v1160_v46 }
 0x253   : > { %v922_v46 = vmov %v1240_v12   ;;  %vm543_vm4 = vcmp.gt.s32.totalorder (%p512_p6), %v1118_v15, %v1240_v12  ;;  %vm544_vm5 = vcmp.gt.s32.totalorder (%p512_p6), %v1122_v22, %v1240_v12  ;;  %vm545_vm6 = vcmp.eq.s32.totalorder (%p512_p6), %v1118_v15, %v1240_v12 }
 0x254   :  { %v547_v35 = vsel %vm543_vm4, 1, %v951_v50  ;;  %v548_v13 = vsel %vm544_vm5, 1, %v951_v50  ;;  %vm546_vm7 = vcmp.eq.s32.totalorder %v1122_v22, %v1240_v12 }
 0x255   :  { %v549_v56 = vsel %vm104_vm2, %v547_v35, 0  ;;  %v550_v59 = vsel %vm104_vm2, %v548_v13, 0 }
 0x256   :  { %v551_v14 = vadd.s32 %v550_v59, %v549_v56 }
 0x258   :  { %v553_v16 = vshrl.u32 %v551_v14, 16  ;;  %v552_v17 = vand.u32 65535, %v551_v14 }
 0x25a   :  { %v555_v6 = vcvt.s32.f32 %v553_v16  ;;  %v554_v18 = vcvt.s32.f32 %v552_v17 }
 0x25c   :  { %558 = vadd.xlane.f32.xlu0 %v555_v6 }
 0x260   :  { %556 = vadd.xlane.f32.xlu0 %v554_v18 }
 0x2e5   :  { %v559_v40 = vpop.xlane.xlu0 %558 }
 0x2e6   :  { %v561_v19 = vcvt.f32.s32 %v559_v40 }
 0x2e8   :  { %v562_v20 = vshll.u32 %v561_v19, 16 }
 0x2e9   :  { %v557_v50 = vpop.xlane.xlu0 %556 }
 0x2ea   :  { %v560_v21 = vcvt.f32.s32 %v557_v50 }
 0x2ec   :  { %v563_v23 = vadd.s32 %v562_v20, %v560_v21 }
 0x2ee   :  { %v564_v24 = vsub.s32 %v1146_v36, %v563_v23 }
 0x2ef LB: > { %v573_v27 = vsub.s32 %v931_v25, %v935_v26  ;;  %v954_v28 = vmov 0   ;;  %s570_s17 = sadd.s32 1, %s939_s17   ;;  %s939_s17 = sphi %s1185_s17, %s570_s17   ;;  %v935_v26 = vphi %v933_v26, %v598_v26   ;;  %v931_v25 = vphi %v929_v25, %v930_v25  }
 0x2f0   : > { %p567_p7 = scmp.ge.s32.totalorder %s570_s17, 9  }
 0x2f1   : > { %v574_v11 = vshra.s32 %v573_v27, 1  ;;  %vm600_vm13 = vcmp.gt.s32.totalorder (%p567_p7), %v564_v24, 0  ;;  %v642_v63 = vcvt.s32.f32 (%p567_p7), %v1143_v30  ;;  %s955_s18 = smov (%p567_p7), [#allocation13]  }
 0x2f2   :  { %s657_s19 = sshll.u32 (%p567_p7), %s955_s18, 4  ;;  %s658_s19 = int_to_ptr.vmem [resolvable:$true] %s657_s19 }
 0x2f3   : > { %v575_v4 = vadd.s32 %v935_v26, %v574_v11  ;;  %v647_v0 = vmax.f32 (%p567_p7), %v642_v63, 1e-06  ;;  %s865_s20 = scalar_lea.vmem (%p567_p7), %s658_s19, 32  ;;  %p870_p9 = scmp.lt.s32.totalorder (%p567_p7), %s658_s19, %s658_s19 }
 0x2f4   :  { %p866_p8 = scmp.ne.s32.totalorder (%p567_p7), %s658_s19, %s865_s20  ;;  %p871_p10 = scmp.lt.s32.totalorder (%p567_p7), %s865_s20, %s865_s20 }
 0x2f5   : > { %vm576_vm8 = vcmp.lt.s32.totalorder %v998_v1, %v575_v4  ;;  %vm577_vm9 = vcmp.lt.s32.totalorder %v1001_v2, %v575_v4  ;;  %783 = vrcp.f32 (%p567_p7), %v647_v0 }
 0x2f6   : > { %vm578_vm10 = vmand %vm545_vm6, %vm576_vm8  ;;  %p872_p11 = por (%p567_p7), %p871_p10, %p870_p9 }
 0x2f7   : > { %vm579_vm11 = vmand %vm546_vm7, %vm577_vm9  ;;  %v580_v29 = vsel %vm578_vm10, 1, %v954_v28 }
 0x2f8   : > { %v581_v3 = vsel %vm579_vm11, 1, %v954_v28  ;;  %v582_v31 = vsel %vm104_vm2, %v580_v29, 0  ;;  %p873_p12 = pnand (%p567_p7), %p872_p11, %p866_p8 }
 0x2f9   : > { %v583_v36 = vsel %vm104_vm2, %v581_v3, 0 }
 0x2fa   : > { %v584_v38 = vadd.s32 %v583_v36, %v582_v31 }
 0x2fc   : > { %v586_v39 = vshrl.u32 %v584_v38, 16  ;;  %v585_v41 = vand.u32 65535, %v584_v38 }
 0x2fe   : > { %v588_v42 = vcvt.s32.f32 %v586_v39  ;;  %v587_v43 = vcvt.s32.f32 %v585_v41 }
 0x300   : > { %591 = vadd.xlane.f32.xlu0 %v588_v42 }
 0x302   :  { %v784_v7 = vpop.eup (%p567_p7), %783 }
 0x304   : > { %589 = vadd.xlane.f32.xlu0 %v587_v43 }
 0x389   : > { %v592_v5 = vpop.xlane.xlu0 %591 }
 0x38a   : > { %v594_v45 = vcvt.f32.s32 %v592_v5 }
 0x38c   : > { %v595_v51 = vshll.u32 %v594_v45, 16 }
 0x38d   : > { %v590_v46 = vpop.xlane.xlu0 %589 }
 0x38e   : > { %v593_v52 = vcvt.f32.s32 %v590_v46 }
 0x390   : > { %v596_v32 = vadd.s32 %v595_v51, %v593_v52  ;;  %569 = sbr.rel (!%p567_p7) target bundleno = 751 (0x2ef), region = 88 }
 0x392   : > { %vm597_vm12 = vcmp.ge.s32.totalorder %v596_v32, %v564_v24 }
 0x393   : > { %v598_v26 = vsel %vm597_vm12, %v935_v26, %v575_v4   ;;  %v599_v9 = vsel %vm597_vm12, %v575_v4, %v931_v25  }
 0x394   : > { %v930_v25 = vmov %v599_v9   ;;  %v601_v53 = vsel (%p567_p7), %vm600_vm13, %v599_v9, 0 }
 0x395   :  { %vm602_vm14 = vcmp.lt.s32.totalorder %v998_v1, %v601_v53  ;;  %vm603_vm15 = vcmp.lt.s32.totalorder %v1001_v2, %v601_v53 }
 0x396   :  { %vm604_vm0 = vmand %vm545_vm6, %vm602_vm14 }
 0x397   :  { %vm605_vm1 = vmand %vm546_vm7, %vm603_vm15 }
 0x398   :  { %vm606_vm3 = vmor %vm543_vm4, %vm604_vm0  ;;  %vm643_vm4 = vcmp.gt.s32.totalorder %v1143_v30, 0 }
 0x399   :  { %vm607_vm8 = vmor %vm544_vm5, %vm605_vm1  ;;  %v697_v1 = vsel %vm606_vm3, 1.0, %v950_v47 }
 0x39a   :  { %v698_v2 = vsel %vm607_vm8, 1.0, %v950_v47 }
 0x39b   :  { %v614_v54 = vcombine.low %v697_v1, %v698_v2 }
 0x39d   :  { %v621_v10 = vrot.slane %v614_v54, %v1066_v49 }
 0x39f   :  { %v623_v44 = vadd.f32 %v1063_v48, %v621_v10  ;;  %v699_v48 = vsel %vm643_vm4, 1.0, %v950_v47 }
 0x3a1   :  { %v624_v60 = vmul.f32 %v623_v44, %v1111_v55 }
 0x3a3   :  { %v632_v33 = vrot.slane %v624_v60, %v1066_v49 }
 0x3a5   :  { %v633_v61 = vcombine.high %v632_v33, %v632_v33  ;;  %v636_v15 = vsel %vm104_vm2, %v632_v33, 0.0 }
 0x3a7   :  { %v637_v62 = vsel %vm104_vm2, %v633_v61, 0.0 }
 0x3a8   :  { %v638_v22 = vadd.f32 %v637_v62, %v636_v15 }
 0x3aa   :  { %639 = vadd.xlane.f32.xlu0 %v638_v22 }
 0x433   :  { %v640_v58 = vpop.xlane.xlu0 %639 }
 0x434   :  { %v641_v55 = vadd.f32 %v640_v58, %v1148_v37 }
 0x436   :  { %v646_v49 = vmul.f32 %v699_v48, %v641_v55 }
 0x438   :  { %v649_v34 = vmul.f32 %v784_v7, %v646_v49 }
 0x43a   :  { %650 = vst [vmem:[#allocation13] sm:$0x3] %v649_v34 }
 0x43b   :  { %876 = shalt.err (!%p873_p12)
}
 0x43c   :  { %660 = dma.vmem_to_hbm [thread:$0]  %s658_s19, 32, %s1237_s5, [#allocation7]  }
 0x43d   :  { %915 = dma.done.wait [#allocation7], 32  }
 0x43e   :  { %916 = vsyncadd [#allocation7], 4294967264 }
 0x43f   :  { %664 = vsyncpa [#allocation6], 1 }
 0x440   :  { %665 = vsyncpa [#allocation9], 1 }
 0x441   :  { %666 = vsyncpa [#allocation12], 1 }
 0x442   :  { %667 = vsyncpa [#allocation7], 1 }

</bundles_post_ra>
